<compile_context>
chip_gen: v6e
topology: v6e:2x2x1
jax: 0.10.0
libtpu: 0.0.40
codegen_flags: <defaults>
</compile_context>

<pallas_src>
import functools

import jax
import jax.numpy as jnp
from jax import lax
from jax.experimental import pallas as pl
from jax.experimental.pallas import tpu as pltpu


LEAKY_SLOPE = 0.1   # myUT.get_act('lrlu') -> nn.LeakyReLU(0.1) in METNetwork
LN_EPS = 1e-5       # nn.LayerNorm default eps

_MiB = 1024 * 1024


def _round_up(x, m):
    return (x + m - 1) // m * m


# --------------------------------------------------------------------------- #
# Hardware / feature detection
# --------------------------------------------------------------------------- #
@functools.lru_cache(maxsize=1)
def _vmem_budget_bytes():
    """~72% of this generation's VMEM (per-TC on v7x)."""
    cap = None
    try:  # hardware query only; not masking kernel errors
        cap = int(pltpu.get_tpu_info().vmem_capacity_bytes)
    except Exception:
        cap = None
    if not cap or cap <= 0:
        cap = 64 * _MiB  # conservative default = v7x per-TC VMEM
    return int(0.72 * cap)


@functools.lru_cache(maxsize=1)
def _single_buffer_params_supported():
    """Probe once whether this Pallas build accepts pipeline_mode=pl.Buffered(1)."""
    def _probe(a_ref, o_ref):
        o_ref[...] = a_ref[...] * 2.0

    try:
        a = jnp.ones((8, 128), jnp.float32)
        out = pl.pallas_call(
            _probe,
            out_shape=jax.ShapeDtypeStruct((16, 128), jnp.float32),
            grid=(2,),
            in_specs=[pl.BlockSpec((8, 128), lambda i: (0, 0),
                                   pipeline_mode=pl.Buffered(1))],
            out_specs=pl.BlockSpec((8, 128), lambda i: (i, 0)),
        )(a)
        jax.block_until_ready(out)
        return True
    except Exception:
        return False


def _resident_spec(block_shape, index_map, single_buf):
    """BlockSpec for grid-constant (resident) operands; single-buffered when supported."""
    if single_buf:
        return pl.BlockSpec(block_shape, index_map, pipeline_mode=pl.Buffered(1))
    return pl.BlockSpec(block_shape, index_map)


# --------------------------------------------------------------------------- #
# Kernels
# --------------------------------------------------------------------------- #
def _epilogue(h, p_ref, n_out, out_dtype):
    """bias + LeakyReLU(0.1) + LayerNorm(n_out) + eval-mode Dropout, all in f32.

    Padded columns of h, bias, gamma, beta are exactly 0, so the unmasked sums
    over n_out_p columns equal the true sums over n_out, and padded output
    columns come out exactly 0 (safe for chained padded inputs).
    """
    bias = p_ref[0:1, :]
    gamma = p_ref[1:2, :]
    beta = p_ref[2:3, :]

    h = h + bias
    h = jnp.maximum(h, LEAKY_SLOPE * h)                 # LeakyReLU, slope in (0,1)

    inv_n = 1.0 / n_out
    s1 = jnp.sum(h, axis=-1, keepdims=True)
    s2 = jnp.sum(h * h, axis=-1, keepdims=True)
    mean = s1 * inv_n
    var = jnp.maximum(s2 * inv_n - mean * mean, 0.0)    # guard f32 cancellation
    h = (h - mean) * lax.rsqrt(var + LN_EPS)
    h = h * gamma + beta

    # Dropout: identity (eval mode).
    # TODO(synk): training-mode dropout (stochastic masking via pltpu.prng_*) not implemented.
    return h.astype(out_dtype)


def _mlp_kernel_resident(x_ref, w_ref, p_ref, o_ref, *, n_out):
    # x_ref: (bm, n_in_p)   w_ref: (n_in_p, n_out_p) resident
    # p_ref: (8, n_out_p) f32, rows 0/1/2 = bias/gamma/beta
    h = jnp.dot(x_ref[...], w_ref[...], preferred_element_type=jnp.float32)
    o_ref[...] = _epilogue(h, p_ref, n_out, o_ref.dtype)


def _mlp_kernel_ktiled(x_ref, w_ref, p_ref, o_ref, acc_ref, *, n_out):
    # grid = (m, k); weight streamed over K; acc_ref: (bm, n_out_p) f32 scratch.
    k = pl.program_id(1)

    @pl.when(k == 0)
    def _():
        acc_ref[...] = jnp.zeros_like(acc_ref)

    acc_ref[...] += jnp.dot(x_ref[...], w_ref[...], preferred_element_type=jnp.float32)

    @pl.when(k == pl.num_programs(1) - 1)
    def _():
        o_ref[...] = _epilogue(acc_ref[...], p_ref, n_out, o_ref.dtype)


# --------------------------------------------------------------------------- #
# VMEM footprint estimates (pipeline buffers + f32 epilogue working set)
# --------------------------------------------------------------------------- #
def _vmem_bytes_resident(bm, n_in_p, n_out_p, x_item, out_item, w_item, param_bufs):
    x_bytes = 2 * bm * n_in_p * x_item               # double-buffered input tile
    o_bytes = 2 * bm * n_out_p * out_item            # double-buffered output tile
    w_bytes = param_bufs * n_in_p * n_out_p * w_item # resident weight
    p_bytes = param_bufs * 8 * n_out_p * 4           # packed bias/gamma/beta
    work = 3 * bm * n_out_p * 4                      # f32 h / temporaries
    return x_bytes + o_bytes + w_bytes + p_bytes + work


def _vmem_bytes_ktiled(bm, tk, n_out_p, x_item, out_item, w_item, param_bufs):
    x_bytes = 2 * bm * tk * x_item
    w_bytes = 2 * tk * n_out_p * w_item
    o_bytes = 2 * bm * n_out_p * out_item
    p_bytes = param_bufs * 8 * n_out_p * 4
    acc = bm * n_out_p * 4
    work = 3 * bm * n_out_p * 4
    return x_bytes + w_bytes + o_bytes + p_bytes + acc + work


# --------------------------------------------------------------------------- #
# Wrapper
# --------------------------------------------------------------------------- #
def mlp_block(x, w, b, gamma, beta, *, bm=None, k_tile=None, unpad_output=True):
    """Fused MLPBlock forward (eval mode).

    x: (B, n_in); w: (kin, n_out) = torch weight.T with kin <= n_in (columns of x
    beyond kin must be zero -- the padded layout produced by unpad_output=False).
    With unpad_output=False the padded (B_p, n_out_p) tensor is returned (padded
    columns are exactly 0), which a subsequent mlp_block call accepts directly.
    k_tile forces the K-tiled (streamed-weight) path with that K tile size.
    """
    B, n_in = x.shape
    kin, n_out = w.shape
    assert kin <= n_in, "weight in-features exceed input width"
    out_dtype = x.dtype

    x_item = x.dtype.itemsize
    w_item = w.dtype.itemsize
    out_item = jnp.dtype(out_dtype).itemsize

    # Lane-dense padding of both feature axes.
    n_in_p = max(128, _round_up(n_in, 128))
    n_out_p = max(128, _round_up(n_out, 128))

    budget = _vmem_budget_bytes()
    single_buf = _single_buffer_params_supported()
    param_bufs = 1 if single_buf else 2

    # ---- choose resident-weight vs K-tiled path -----------------------------
    use_k_tiling = k_tile is not None
    if not use_k_tiling:
        min_resident = _vmem_bytes_resident(16, n_in_p, n_out_p, x_item, out_item,
                                            w_item, param_bufs)
        if min_resident * 1.15 > budget:
            use_k_tiling = True    # weight too big to hold resident (e.g. v7x 64 MiB/TC)
    if use_k_tiling:
        tk = int(k_tile) if k_tile is not None else 512
        tk = min(max(128, _round_up(tk, 128)), n_in_p)
        n_in_p = _round_up(n_in_p, tk)     # make K tiles exact (zero-padded)
        grid_k = n_in_p // tk
    else:
        tk = n_in_p
        grid_k = 1
    # TODO(synk): no n_out tiling; absurdly wide layers that exceed VMEM even with
    # bm=16 and K-tiling are not handled.

    # ---- batch tile choice ---------------------------------------------------
    if bm is None:
        if B <= 1024:
            bm = _round_up(B, 16)
        else:
            bm = min(512, _round_up(pl.cdiv(B, 2), 16))
    bm = max(16, _round_up(int(bm), 16))          # bf16-safe sublane multiple

    def _footprint(bm_):
        if use_k_tiling:
            return _vmem_bytes_ktiled(bm_, tk, n_out_p, x_item, out_item, w_item, param_bufs)
        return _vmem_bytes_resident(bm_, n_in_p, n_out_p, x_item, out_item, w_item, param_bufs)

    while bm > 16 and _footprint(bm) * 1.15 > budget:
        bm = max(16, _round_up(bm // 2, 16))

    grid_m = pl.cdiv(B, bm)
    # Even grid_m so the "parallel" batch axis splits evenly across v7x's 2 TCs.
    if grid_m > 1 and grid_m % 2 == 1:
        bm_even = max(16, _round_up(pl.cdiv(B, grid_m + 1), 16))
        if pl.cdiv(B, bm_even) % 2 == 0:
            bm = bm_even
            grid_m = pl.cdiv(B, bm)
    B_p = grid_m * bm

    # ---- pad operands (zeros keep the unmasked LayerNorm stats exact) --------
    x_p = x
    if B_p != B or n_in_p != n_in:
        x_p = jnp.pad(x, ((0, B_p - B), (0, n_in_p - n_in)))
    w_p = w
    if n_in_p != kin or n_out_p != n_out:
        w_p = jnp.pad(w, ((0, n_in_p - kin), (0, n_out_p - n_out)))
    # Packed params: one (8, n_out_p) f32 block; rows 0/1/2 = bias/gamma/beta.
    params = jnp.zeros((8, n_out_p), jnp.float32)
    params = params.at[0, :n_out].set(b.astype(jnp.float32))
    params = params.at[1, :n_out].set(gamma.astype(jnp.float32))
    params = params.at[2, :n_out].set(beta.astype(jnp.float32))

    # ---- grid spec ------------------------------------------------------------
    if use_k_tiling:
        kernel = functools.partial(_mlp_kernel_ktiled, n_out=n_out)
        grid = (grid_m, grid_k)
        in_specs = [
            pl.BlockSpec((bm, tk), lambda i, k: (i, k)),
            pl.BlockSpec((tk, n_out_p), lambda i, k: (k, 0)),
            _resident_spec((8, n_out_p), lambda i, k: (0, 0), single_buf),
        ]
        out_specs = pl.BlockSpec((bm, n_out_p), lambda i, k: (i, 0))
        scratch_shapes = [pltpu.VMEM((bm, n_out_p), jnp.float32)]
        semantics = ("parallel", "arbitrary")
    else:
        kernel = functools.partial(_mlp_kernel_resident, n_out=n_out)
        grid = (grid_m,)
        in_specs = [
            pl.BlockSpec((bm, n_in_p), lambda i: (i, 0)),
            _resident_spec((n_in_p, n_out_p), lambda i: (0, 0), single_buf),
            _resident_spec((8, n_out_p), lambda i: (0, 0), single_buf),
        ]
        out_specs = pl.BlockSpec((bm, n_out_p), lambda i: (i, 0))
        scratch_shapes = []
        semantics = ("parallel",)

    out_p = pl.pallas_call(
        kernel,
        out_shape=jax.ShapeDtypeStruct((B_p, n_out_p), out_dtype),
        grid_spec=pltpu.PrefetchScalarGridSpec(
            num_scalar_prefetch=0,
            grid=grid,
            in_specs=in_specs,
            out_specs=out_specs,
            scratch_shapes=scratch_shapes,
        ),
        compiler_params=pltpu.CompilerParams(
            dimension_semantics=semantics,
            vmem_limit_bytes=budget,
        ),
    )(x_p, w_p, params)

    if not unpad_output:
        return out_p           # (B_p, n_out_p); padded columns are exactly 0
    out = out_p
    if B_p != B:
        out = out[:B]
    if n_out_p != n_out:
        out = out[:, :n_out]
    return out


def mlp_block_ref(x, w, b, gamma, beta):
    """Pure-JAX reference of the same forward (eval mode)."""
    h = x.astype(jnp.float32) @ w.astype(jnp.float32) + b
    h = jnp.where(h >= 0, h, LEAKY_SLOPE * h)
    mean = jnp.mean(h, axis=-1, keepdims=True)
    var = jnp.mean((h - mean) ** 2, axis=-1, keepdims=True)
    h = (h - mean) / jnp.sqrt(var + LN_EPS)
    return (h * gamma + beta).astype(x.dtype)


if __name__ == "__main__":
    def make_inputs(key, B, n_in, n_out, dtype=jnp.float32):
        kx, kw, kb = jax.random.split(key, 3)
        bound = 1.0 / (n_in ** 0.5)
        x = jax.random.normal(kx, (B, n_in), jnp.float32)
        w = jax.random.uniform(kw, (n_in, n_out), jnp.float32, -bound, bound)
        b = jax.random.uniform(kb, (n_out,), jnp.float32, -bound, bound)
        gamma = jnp.ones((n_out,), jnp.float32)   # nn.LayerNorm default weight
        beta = jnp.zeros((n_out,), jnp.float32)   # nn.LayerNorm default bias
        return x.astype(dtype), w.astype(dtype), b, gamma, beta

    k1, k2, k3, k4, k5 = jax.random.split(jax.random.PRNGKey(0), 5)

    # 1) f32, aligned small shapes (n_out multiple of 128)
    x, w, b, g, be = make_inputs(k1, 16, 32, 128)
    out = jax.block_until_ready(mlp_block(x, w, b, g, be))
    ref = mlp_block_ref(x, w, b, g, be)
    assert out.shape == ref.shape
    assert jnp.allclose(out, ref, atol=1e-4, rtol=1e-4), "f32 aligned mismatch"

    # 2) f32, ragged shapes (batch + n_in + n_out padding, one-pass LayerNorm stats)
    x, w, b, g, be = make_inputs(k2, 20, 24, 72)
    out = jax.block_until_ready(mlp_block(x, w, b, g, be))
    ref = mlp_block_ref(x, w, b, g, be)
    assert out.shape == ref.shape
    assert jnp.allclose(out, ref, atol=1e-4, rtol=1e-4), "f32 ragged mismatch"

    # 3) bf16 storage for x/w/out (halves dominant HBM traffic; math stays f32 in-kernel)
    x, w, b, g, be = make_inputs(k3, 32, 32, 128, dtype=jnp.bfloat16)
    out = jax.block_until_ready(mlp_block(x, w, b, g, be))
    ref = mlp_block_ref(x.astype(jnp.float32), w.astype(jnp.float32), b, g, be)
    assert out.dtype == jnp.bfloat16
    assert jnp.allclose(out.astype(jnp.float32), ref, atol=5e-2, rtol=5e-2), "bf16 mismatch"

    # 4) forced K-tiled path (streamed weight + f32 accumulator + pl.when epilogue)
    x, w, b, g, be = make_inputs(k4, 24, 384, 200)
    out = jax.block_until_ready(mlp_block(x, w, b, g, be, k_tile=128))
    ref = mlp_block_ref(x, w, b, g, be)
    assert out.shape == ref.shape
    assert jnp.allclose(out, ref, atol=1e-3, rtol=1e-3), "k-tiled mismatch"

    # 5) chained blocks keep the padded layout between layers (no unpad copy)
    x, w1, b1, g1, be1 = make_inputs(k5, 20, 24, 72)
    _, w2, b2, g2, be2 = make_inputs(jax.random.PRNGKey(1), 1, 72, 48)
    y1_pad = mlp_block(x, w1, b1, g1, be1, unpad_output=False)      # (B_p, 128), pad cols = 0
    y2 = jax.block_until_ready(mlp_block(y1_pad, w2, b2, g2, be2))[: x.shape[0]]
    ref2 = mlp_block_ref(mlp_block_ref(x, w1, b1, g1, be1), w2, b2, g2, be2)
    assert y2.shape == ref2.shape
    assert jnp.allclose(y2, ref2, atol=1e-3, rtol=1e-3), "chained mismatch"

    print("KERNEL_OK")
</pallas_src>

<mosaic_0001>
module attributes {stable_mosaic.version = 11 : i64} {
  func.func @_probe(%arg0: i32, %arg1: memref<8x128xf32, #tpu.memory_space<vmem>>, %arg2: memref<8x128xf32, #tpu.memory_space<vmem>>) attributes {dimension_semantics = [#tpu.dimension_semantics<arbitrary>], iteration_bounds = array<i64: 2>, scalar_prefetch = 0 : i64, scratch_operands = 0 : i64, tpu.core_type = #tpu.core_type<tc>, window_params = [{pipeline_mode = #tpu.pipeline_mode<synchronous>, transform_indices = @transform_0, window_bounds = array<i64: 8, 128>}, {transform_indices = @transform_1, window_bounds = array<i64: 8, 128>}]} {
    %c0 = arith.constant 0 : index
    %c0_0 = arith.constant 0 : index
    %0 = vector.load %arg1[%c0, %c0_0] : memref<8x128xf32, #tpu.memory_space<vmem>>, vector<8x128xf32>
    %cst = arith.constant 2.000000e+00 : f32
    %1 = vector.broadcast %cst : f32 to vector<8x128xf32>
    %2 = arith.mulf %0, %1 : vector<8x128xf32>
    %c0_1 = arith.constant 0 : index
    %c0_2 = arith.constant 0 : index
    %3 = vector.load %arg2[%c0_1, %c0_2] : memref<8x128xf32, #tpu.memory_space<vmem>>, vector<8x128xf32>
    tpu.vector_store %arg2[%c0_1, %c0_2], %2 {strides = array<i32>} : memref<8x128xf32, #tpu.memory_space<vmem>>, vector<8x128xf32>,
    return
  }
  func.func @transform_0(%arg0: i32) -> (i32, i32) {
    %c0_i32 = arith.constant 0 : i32
    %c0_i32_0 = arith.constant 0 : i32
    %c0_i32_1 = arith.constant 0 : i32
    return %c0_i32, %c0_i32_0 : i32, i32
  }
  func.func @transform_1(%arg0: i32) -> (i32, i32) {
    %c0_i32 = arith.constant 0 : i32
    %c0_i32_0 = arith.constant 0 : i32
    return %arg0, %c0_i32 : i32, i32
  }
}

module attributes {stable_mosaic.version = 11 : i64} {
  func.func @_mlp_kernel_resident(%arg0: i32, %arg1: memref<16x128xf32, #tpu.memory_space<vmem>>, %arg2: memref<128x128xf32, #tpu.memory_space<vmem>>, %arg3: memref<8x128xf32, #tpu.memory_space<vmem>>, %arg4: memref<16x128xf32, #tpu.memory_space<vmem>>) attributes {dimension_semantics = [#tpu.dimension_semantics<parallel>], iteration_bounds = array<i64: 1>, scalar_prefetch = 0 : i64, scratch_operands = 0 : i64, tpu.core_type = #tpu.core_type<tc>, window_params = [{transform_indices = @transform_0, window_bounds = array<i64: 16, 128>}, {pipeline_mode = #tpu.pipeline_mode<synchronous>, transform_indices = @transform_1, window_bounds = array<i64: 128, 128>}, {pipeline_mode = #tpu.pipeline_mode<synchronous>, transform_indices = @transform_2, window_bounds = array<i64: 8, 128>}, {transform_indices = @transform_3, window_bounds = array<i64: 16, 128>}]} {
    %c0 = arith.constant 0 : index
    %c0_0 = arith.constant 0 : index
    %0 = vector.load %arg1[%c0, %c0_0] : memref<16x128xf32, #tpu.memory_space<vmem>>, vector<16x128xf32>
    %c0_1 = arith.constant 0 : index
    %c0_2 = arith.constant 0 : index
    %1 = vector.load %arg2[%c0_1, %c0_2] : memref<128x128xf32, #tpu.memory_space<vmem>>, vector<128x128xf32>
    %cst = arith.constant dense<0.000000e+00> : vector<16x128xf32>
    %2 = tpu.matmul %0, %1, %cst {dimension_numbers = #tpu.dot_dimension_numbers<[1], [0], [0], [1], [0, 0, 1, 1], [], []>} : vector<16x128xf32>, vector<128x128xf32>, vector<16x128xf32> -> vector<16x128xf32>
    %c0_3 = arith.constant 0 : index
    %c0_4 = arith.constant 0 : index
    %3 = vector.load %arg3[%c0_3, %c0_4] : memref<8x128xf32, #tpu.memory_space<vmem>>, vector<1x128xf32>
    %c1 = arith.constant 1 : index
    %c0_5 = arith.constant 0 : index
    %4 = vector.load %arg3[%c1, %c0_5] : memref<8x128xf32, #tpu.memory_space<vmem>>, vector<1x128xf32>
    %c2 = arith.constant 2 : index
    %c0_6 = arith.constant 0 : index
    %5 = vector.load %arg3[%c2, %c0_6] : memref<8x128xf32, #tpu.memory_space<vmem>>, vector<1x128xf32>
    %6 = vector.broadcast %3 : vector<1x128xf32> to vector<16x128xf32>
    %7 = arith.addf %2, %6 : vector<16x128xf32>
    %cst_7 = arith.constant 1.000000e-01 : f32
    %8 = vector.broadcast %cst_7 : f32 to vector<16x128xf32>
    %9 = arith.mulf %8, %7 : vector<16x128xf32>
    %10 = arith.maximumf %7, %9 : vector<16x128xf32>
    %cst_8 = arith.constant dense<0.000000e+00> : vector<16xf32>
    %11 = vector.multi_reduction <add>, %10, %cst_8 [1] : vector<16x128xf32> to vector<16xf32>
    %12 = vector.shape_cast %11 : vector<16xf32> to vector<16x1xf32>
    %13 = arith.mulf %10, %10 : vector<16x128xf32>
    %cst_9 = arith.constant dense<0.000000e+00> : vector<16xf32>
    %14 = vector.multi_reduction <add>, %13, %cst_9 [1] : vector<16x128xf32> to vector<16xf32>
    %15 = vector.shape_cast %14 : vector<16xf32> to vector<16x1xf32>
    %cst_10 = arith.constant 7.812500e-03 : f32
    %16 = vector.broadcast %cst_10 : f32 to vector<16x1xf32>
    %17 = arith.mulf %12, %16 : vector<16x1xf32>
    %cst_11 = arith.constant 7.812500e-03 : f32
    %18 = vector.broadcast %cst_11 : f32 to vector<16x1xf32>
    %19 = arith.mulf %15, %18 : vector<16x1xf32>
    %20 = arith.mulf %17, %17 : vector<16x1xf32>
    %21 = arith.subf %19, %20 : vector<16x1xf32>
    %cst_12 = arith.constant 0.000000e+00 : f32
    %22 = vector.broadcast %cst_12 : f32 to vector<16x1xf32>
    %23 = arith.maximumf %21, %22 : vector<16x1xf32>
    %24 = vector.broadcast %17 : vector<16x1xf32> to vector<16x128xf32>
    %25 = arith.subf %10, %24 : vector<16x128xf32>
    %cst_13 = arith.constant 9.99999974E-6 : f32
    %26 = vector.broadcast %cst_13 : f32 to vector<16x1xf32>
    %27 = arith.addf %23, %26 : vector<16x1xf32>
    %28 = math.rsqrt %27 : vector<16x1xf32>
    %29 = vector.broadcast %28 : vector<16x1xf32> to vector<16x128xf32>
    %30 = arith.mulf %25, %29 : vector<16x128xf32>
    %31 = vector.broadcast %4 : vector<1x128xf32> to vector<16x128xf32>
    %32 = arith.mulf %30, %31 : vector<16x128xf32>
    %33 = vector.broadcast %5 : vector<1x128xf32> to vector<16x128xf32>
    %34 = arith.addf %32, %33 : vector<16x128xf32>
    %c0_14 = arith.constant 0 : index
    %c0_15 = arith.constant 0 : index
    %35 = vector.load %arg4[%c0_14, %c0_15] : memref<16x128xf32, #tpu.memory_space<vmem>>, vector<16x128xf32>
    tpu.vector_store %arg4[%c0_14, %c0_15], %34 {strides = array<i32>} : memref<16x128xf32, #tpu.memory_space<vmem>>, vector<16x128xf32>,
    return
  }
  func.func @transform_0(%arg0: i32) -> (i32, i32) {
    %c0_i32 = arith.constant 0 : i32
    %c0_i32_0 = arith.constant 0 : i32
    return %arg0, %c0_i32 : i32, i32
  }
  func.func @transform_1(%arg0: i32) -> (i32, i32) {
    %c0_i32 = arith.constant 0 : i32
    %c0_i32_0 = arith.constant 0 : i32
    %c0_i32_1 = arith.constant 0 : i32
    return %c0_i32, %c0_i32_0 : i32, i32
  }
  func.func @transform_2(%arg0: i32) -> (i32, i32) {
    %c0_i32 = arith.constant 0 : i32
    %c0_i32_0 = arith.constant 0 : i32
    %c0_i32_1 = arith.constant 0 : i32
    return %c0_i32, %c0_i32_0 : i32, i32
  }
  func.func @transform_3(%arg0: i32) -> (i32, i32) {
    %c0_i32 = arith.constant 0 : i32
    %c0_i32_0 = arith.constant 0 : i32
    return %arg0, %c0_i32 : i32, i32
  }
}

</mosaic_0001>

<bundles_post_ra>
// kernel: tpu_custom_call.1
= control target key start
LH: loop header
LB: loop body
LE: loop exit
PB: predicated region body
PF: predicated region fallthrough
CT: control target
= control target key end

     0   :  { %6 = vsyncpa [#allocation3], 0  ;;  %s448_s0 = inlined_call_operand.hbm [shape: f32[8,128], index: 0, kind: input, shape index: {}]   ;;  %s449_s1 = inlined_call_operand.hbm [shape: f32[16,128], index: 1, kind: output, shape index: {}]  }
   0x1   :  { %7 = vsyncpa [#allocation4], 0 }
   0x2   :  { %9 = vsyncpa [#allocation4 + $0x1], 0  ;;  %s348_s6 = smov 0   ;;  %s350_s7 = smov 0  }
   0x3   :  { %s352_s8 = smov 0   ;;  %s354_s9 = smov 0  }
   0x4 LB: > { %s369_s10 = sadd.s32 4294967295, %s334_s9   ;;  %s184_s11 = sadd.s32 4294967294, %s334_s9   ;;  %s334_s9 = sphi %s354_s9, %s457_s9   ;;  %s330_s8 = sphi %s352_s8, %s456_s8   ;;  %s326_s7 = sphi %s350_s7, %s455_s7   ;;  %s322_s6 = sphi %s348_s6, %s454_s6  }
   0x5   : > { %s373_s12 = sadd.s32 1, %s334_s9   ;;  %s43_s13 = sadd.s32 1, %s330_s8 }
   0x6   : > { %s40_s14 = ssub.s32 %s334_s9, %s373_s12  ;;  %p53_p0 = scmp.ne.s32.totalorder %s330_s8, %s326_s7 }
   0x7   : > { %p41_p1 = scmp.eq.s32.totalorder %s40_s14, 0  ;;  %p54_p2 = scmp.eq.s32.totalorder %s369_s10, 1 }
   0x8   : > { %p59_p3 = scmp.ne.s32.totalorder %s326_s7, %s322_s6  ;;  %p60_p4 = scmp.eq.s32.totalorder %s184_s11, 1 }
   0x9   : > { %s384_s15 = scalar_select %p41_p1, %s330_s8, %s43_s13  }
   0xa   : > { %p386_p5 = por %p54_p2, %p53_p0  ;;  %p390_p6 = por %p60_p4, %p59_p3 }
   0xb   : > { %p185_p7 = scmp.ge.s32.totalorder %s334_s9, 1  ;;  %p67_p8 = scmp.lt.s32.totalorder %s334_s9, 3 }
   0xc   : > { %s451_s17 = scalar_select %p390_p6, 1, 0 }
   0xd   : > { %p208_p9 = scmp.eq.s32.totalorder %s369_s10, 0  ;;  %p397_p10 = pnand %p185_p7, %p67_p8 }
   0xe   : > { %s336_s19 = smov [#allocation2]  }
   0xf   : > { %s80_s20 = sshll.u32 %s336_s19, 4  ;;  %p200_p11 = pneg %p397_p10  ;;  %s81_s20 = int_to_ptr.vmem [resolvable:$true] %s80_s20 }
  0x10   : > { %s255_s21 = scalar_lea.vmem %s81_s20, 128  ;;  %p263_p3 = scmp.lt.s32.totalorder %s81_s20, %s81_s20 }
  0x11   : > { %p201_p12 = pnand %p208_p9, %p200_p11  ;;  %p256_p0 = scmp.ne.s32.totalorder %s81_s20, %s255_s21 }
  0x12   : > { %p264_p4 = scmp.lt.s32.totalorder %s255_s21, %s255_s21 }
  0x13   : > { %p246_p13 = pneg %p201_p12 }
  0x14   : > { %p265_p6 = por %p264_p4, %p263_p3 }
  0x15   : > { %p258_p1 = pnand %p256_p0, %p246_p13 }
  0x17   : > { %p259_p2 = pneg %p258_p1 }
  0x19   : > { %p266_p7 = pnand %p265_p6, %p259_p2 }
  0x1b   : > { %269 = shalt.err (!%p266_p7)
}
  0x1c   : > { %203 = dma.hbm_to_vmem [thread:$0]  (!%p201_p12), %s448_s0, 128, %s81_s20, [#allocation3]  }
  0x1d   : > { %93 = sbr.rel (%p397_p10) target bundleno = 60 (0x3c), region = 24 }
  0x22   : > { %313 = dma.done.wait (%p208_p9), [#allocation3], 128  }
  0x23   : > { %315 = vsyncadd (%p208_p9), [#allocation3], 4294967168  ;;  %s105_s24 = sand.u32 1, %s326_s7   ;;  %s191_s28 = sshll.u32 %s369_s10, 7  ;;  %v108_v0 = vld [vmem:[#allocation2] sm:$0xff] }
  0x24   : > { %s189_s25 = sshll.u32 %s105_s24, 3  ;;  %v109_v1 = vmul.f32 2.0, %v108_v0  ;;  %s123_s2 = scalar_lea.hbm %s449_s1, %s191_s28 }
  0x25   : > { %s107_s26 = scalar_lea.vmem [#allocation5], %s189_s25  ;;  %s112_s3 = scalar_lea.sflag [#allocation4], %s105_s24 }
  0x26   : > { %s125_s27 = sshll.u32 %s107_s26, 4  ;;  %110 = vst [vmem:[%s107_s26] sm:$0xff] %v109_v1  ;;  %s337_s5 = smov [#allocation5]   ;;  %s126_s27 = int_to_ptr.vmem [resolvable:$true] %s125_s27 }
  0x27   : > { %s270_s4 = scalar_lea.vmem %s126_s27, 128  ;;  %s274_s11 = sshll.u32 %s337_s5, 4  ;;  %s275_s11 = int_to_ptr.vmem [resolvable:$false] %s274_s11 }
  0x28   : > { %p271_p6 = scmp.ne.s32.totalorder %s126_s27, %s270_s4  ;;  %s276_s13 = scalar_lea.vmem %s275_s11, 256 }
  0x29   : > { %p277_p10 = scmp.lt.s32.totalorder %s126_s27, %s275_s11  ;;  %p278_p11 = scmp.lt.s32.totalorder %s276_s13, %s270_s4 }
  0x2a   : > { %p272_p8 = pnand %p271_p6, %p386_p5 }
  0x2b   : > { %p279_p12 = por %p278_p11, %p277_p10 }
  0x2c   : > { %p273_p9 = pneg %p272_p8 }
  0x2e   : > { %p280_p13 = pnand %p279_p12, %p273_p9 }
  0x30   : > { %283 = shalt.err (!%p280_p13)
}
  0x31   : > { %s284_s10 = scalar_lea.hbm %s123_s2, 128  ;;  %s288_s19 = scalar_lea.hbm %s449_s1, 256 }
  0x32   : > { %p285_p0 = scmp.ne.s32.totalorder %s123_s2, %s284_s10  ;;  %p289_p3 = scmp.lt.s32.totalorder %s123_s2, %s449_s1 }
  0x33   : > { %p290_p4 = scmp.lt.s32.totalorder %s288_s19, %s284_s10 }
  0x34   : > { %p286_p1 = pnand %p285_p0, %p386_p5 }
  0x35   : > { %p291_p7 = por %p290_p4, %p289_p3 }
  0x36   : > { %p287_p2 = pneg %p286_p1 }
  0x38   : > { %p292_p6 = pnand %p291_p7, %p287_p2 }
  0x3a   : > { %295 = shalt.err (!%p292_p6)
}
  0x3b   : > { %198 = dma.vmem_to_hbm [thread:$0]  (%p386_p5), %s126_s27, 128, %s123_s2, %s112_s3  }
  0x3c PF: > { %p210_p8 = scmp.ge.s32.totalorder %s334_s9, 2  ;;  %s137_s22 = sand.u32 1, %s322_s6  }
  0x3d   : > { %p453_p9 = scmp.ne.s32.totalorder %s451_s17, 0  ;;  %s138_s23 = scalar_lea.sflag [#allocation4], %s137_s22 }
  0x3f   : > { %p205_p10 = pnand %p210_p8, %p453_p9 }
  0x41   : > { %p206_p11 = pneg %p205_p10 }
  0x43   : > { %317 = dma.done.wait (%p206_p11), %s138_s23, 128  }
  0x44   : > { %319 = vsyncadd (%p206_p11), %s138_s23, 4294967168  ;;  %p12_p12 = scmp.ge.s32.totalorder %s373_s12, 4   ;;  %s454_s6 = smov %s326_s7 }
  0x45   : > { %s455_s7 = smov %s330_s8  ;;  %s456_s8 = smov %s384_s15 }
  0x46   : > { %s457_s9 = smov %s373_s12  ;;  %14 = sbr.rel (!%p12_p12) target bundleno = 4 (0x4), region = 61 }
  0x4b   :  { %143 = vsyncpa [#allocation3], 1 }
  0x4c   :  { %145 = vsyncpa [#allocation3 + $0x1], 1 }
  0x4d   :  { %146 = vsyncpa [#allocation4], 1 }
  0x4e   :  { %148 = vsyncpa [#allocation4 + $0x1], 1 }

// kernel: tpu_custom_call.1
= control target key start
LH: loop header
LB: loop body
LE: loop exit
PB: predicated region body
PF: predicated region fallthrough
CT: control target
= control target key end

     0   :  { %8 = vsyncpa [#allocation3], 0  ;;  %s417_s0 = inlined_call_operand.hbm [shape: f32[16,128], index: 0, kind: input, shape index: {}]   ;;  %s418_s1 = inlined_call_operand.hbm [shape: f32[128,128], index: 1, kind: input, shape index: {}]   ;;  %s419_s2 = inlined_call_operand.hbm [shape: f32[8,128], index: 2, kind: input, shape index: {}]   ;;  %s420_s3 = inlined_call_operand.hbm [shape: f32[16,128], index: 3, kind: output, shape index: {}]  }
   0x1   :  { %9 = vsyncpa [#allocation6], 0 }
   0x2   :  { %10 = vsyncpa [#allocation4], 0  ;;  %s370_s12 = smov [#allocation5]   ;;  %s371_s14 = smov [#allocation2]  }
   0x3   :  { %s28_s13 = sshll.u32 %s370_s12, 4  ;;  %s16_s15 = sshll.u32 %s371_s14, 4  ;;  %s29_s13 = int_to_ptr.vmem [resolvable:$true] %s28_s13  ;;  %s17_s15 = int_to_ptr.vmem [resolvable:$true] %s16_s15 }
   0x4   :  { %s292_s16 = scalar_lea.vmem %s29_s13, 2048  ;;  %p297_p1 = scmp.lt.s32.totalorder %s29_s13, %s29_s13 }
   0x5   :  { %p293_p0 = scmp.ne.s32.totalorder %s29_s13, %s292_s16  ;;  %p298_p2 = scmp.lt.s32.totalorder %s292_s16, %s292_s16 }
   0x7   :  { %p299_p3 = por %p298_p2, %p297_p1 }
   0x9   :  { %p300_p4 = pnand %p299_p3, %p293_p0 }
   0xb   :  { %303 = shalt.err (!%p300_p4)
}
   0xc   :  { %s372_s17 = smov 128   ;;  %s373_s18 = smov 8  }
   0xd   :  { %34 = dma.hbm_to_vmem [thread:$0]  %s418_s1, 2048, %s29_s13, [#allocation6], %s372_s17, %s372_s17, %s373_s18  }
   0xe   :  { %s312_s21 = scalar_lea.vmem %s17_s15, 256  ;;  %p317_p6 = scmp.lt.s32.totalorder %s17_s15, %s17_s15 }
   0xf   :  { %p313_p5 = scmp.ne.s32.totalorder %s17_s15, %s312_s21  ;;  %p318_p7 = scmp.lt.s32.totalorder %s312_s21, %s312_s21 }
  0x11   :  { %p319_p8 = por %p318_p7, %p317_p6 }
  0x13   :  { %p320_p9 = pnand %p319_p8, %p313_p5 }
  0x15   :  { %323 = shalt.err (!%p320_p9)
}
  0x16   :  { %22 = dma.hbm_to_vmem [thread:$0]  %s417_s0, 256, %s17_s15, [#allocation3], %s372_s17, %s372_s17, %s373_s18  }
  0x17   :  { %s374_s24 = smov [#allocation7]  }
  0x18   :  { %s41_s25 = sshll.u32 %s374_s24, 4  ;;  %s42_s25 = int_to_ptr.vmem [resolvable:$true] %s41_s25 }
  0x19   :  { %s332_s26 = scalar_lea.vmem %s42_s25, 128  ;;  %p337_p11 = scmp.lt.s32.totalorder %s42_s25, %s42_s25 }
  0x1a   :  { %p333_p10 = scmp.ne.s32.totalorder %s42_s25, %s332_s26  ;;  %p338_p12 = scmp.lt.s32.totalorder %s332_s26, %s332_s26 }
  0x1c   :  { %p339_p13 = por %p338_p12, %p337_p11 }
  0x1e   :  { %p340_p0 = pnand %p339_p13, %p333_p10 }
  0x20   :  { %343 = shalt.err (!%p340_p0)
}
  0x21   :  { %44 = dma.hbm_to_vmem [thread:$0]  %s419_s2, 128, %s42_s25, [#allocation6]  }
  0x22   :  { %364 = dma.done.wait [#allocation3], 256  }
  0x23   :  { %365 = vsyncadd [#allocation3], 4294967040 }
  0x24   :  { %366 = dma.done.wait [#allocation6], 2176  }
  0x25   :  { %367 = vsyncadd [#allocation6], 4294965120  ;;  %v71_v0 = vld [vmem:[#allocation5 + $0x78] sm:$0xff]  ;;  %v70_v1 = vld [vmem:[#allocation5 + $0x70] sm:$0xff]  ;;  %s375_s0 = smov [#allocation8]  }
  0x26   :  { %239 = vmatprep.subr.mxu0 %v71_v0  ;;  %v69_v2 = vld [vmem:[#allocation5 + $0x68] sm:$0xff]  ;;  %v68_v3 = vld [vmem:[#allocation5 + $0x60] sm:$0xff]  ;;  %v54_v4 = vld [vmem:[#allocation2] sm:$0xff]  ;;  %s205_s2 = sshll.u32 %s375_s0, 4  ;;  %s206_s2 = int_to_ptr.vmem [resolvable:$true] %s205_s2 }
  0x27   :  { %240 = vmatpush3.msra.mxu0 %v71_v0  ;;  %v67_v5 = vld [vmem:[#allocation5 + $0x58] sm:$0xff]  ;;  %271 = vmatprep.mubr.f32.mxu0 %v54_v4  ;;  %v66_v6 = vld [vmem:[#allocation5 + $0x50] sm:$0xff]  ;;  %v65_v7 = vld [vmem:[#allocation5 + $0x48] sm:$0xff]  ;;  %s344_s28 = scalar_lea.vmem %s206_s2, 256  ;;  %p349_p2 = scmp.lt.s32.totalorder %s206_s2, %s206_s2 }
  0x28   :  { %241 = vmatprep.subr.mxu0 %v70_v1  ;;  %v64_v8 = vld [vmem:[#allocation5 + $0x40] sm:$0xff]  ;;  %v63_v9 = vld [vmem:[#allocation5 + $0x38] sm:$0xff]  ;;  %v62_v10 = vld [vmem:[#allocation5 + $0x30] sm:$0xff]  ;;  %p345_p1 = scmp.ne.s32.totalorder %s206_s2, %s344_s28  ;;  %p350_p3 = scmp.lt.s32.totalorder %s344_s28, %s344_s28 }
  0x29   :  { %242 = vmatpush3.msra.mxu0 %v70_v1  ;;  %v61_v11 = vld [vmem:[#allocation5 + $0x28] sm:$0xff]  ;;  %v60_v12 = vld [vmem:[#allocation5 + $0x20] sm:$0xff]  ;;  %v59_v13 = vld [vmem:[#allocation5 + $0x18] sm:$0xff] }
  0x2a   :  { %243 = vmatprep.subr.mxu0 %v69_v2  ;;  %v58_v14 = vld [vmem:[#allocation5 + $0x10] sm:$0xff]  ;;  %v57_v15 = vld [vmem:[#allocation5 + $0x8] sm:$0xff]  ;;  %v56_v16 = vld [vmem:[#allocation5] sm:$0xff]  ;;  %p351_p4 = por %p350_p3, %p349_p2 }
  0x2b   :  { %244 = vmatpush3.msra.mxu0 %v69_v2  ;;  %v55_v17 = vld [vmem:[#allocation2 + $0x8] sm:$0xff]  ;;  %v218_v18 = vld [vmem:[#allocation7] ss:$0 sm:$0xff]  ;;  %v219_v47 = vld [vmem:[#allocation7 + $0x1] ss:$0 sm:$0xff] }
  0x2c   :  { %245 = vmatprep.subr.mxu0 %v68_v3  ;;  %v220_v49 = vld [vmem:[#allocation7 + $0x2] ss:$0 sm:$0xff]  ;;  %p352_p5 = pnand %p351_p4, %p345_p1 }
  0x2d   :  { %246 = vmatpush3.msra.mxu0 %v68_v3 }
  0x2e   :  { %247 = vmatprep.subr.mxu0 %v67_v5 }
  0x2f   :  { %248 = vmatpush3.msra.mxu0 %v67_v5 }
  0x30   :  { %249 = vmatprep.subr.mxu0 %v66_v6 }
  0x31   :  { %250 = vmatpush3.msra.mxu0 %v66_v6 }
  0x32   :  { %251 = vmatprep.subr.mxu0 %v65_v7 }
  0x33   :  { %252 = vmatpush3.msra.mxu0 %v65_v7 }
  0x34   :  { %253 = vmatprep.subr.mxu0 %v64_v8 }
  0x35   :  { %254 = vmatpush3.msra.mxu0 %v64_v8 }
  0x36   :  { %255 = vmatprep.subr.mxu0 %v63_v9 }
  0x37   :  { %256 = vmatpush3.msra.mxu0 %v63_v9 }
  0x38   :  { %257 = vmatprep.subr.mxu0 %v62_v10 }
  0x39   :  { %258 = vmatpush3.msra.mxu0 %v62_v10 }
  0x3a   :  { %259 = vmatprep.subr.mxu0 %v61_v11 }
  0x3b   :  { %260 = vmatpush3.msra.mxu0 %v61_v11 }
  0x3c   :  { %261 = vmatprep.subr.mxu0 %v60_v12 }
  0x3d   :  { %262 = vmatpush3.msra.mxu0 %v60_v12 }
  0x3e   :  { %263 = vmatprep.subr.mxu0 %v59_v13 }
  0x3f   :  { %264 = vmatpush3.msra.mxu0 %v59_v13 }
  0x40   :  { %265 = vmatprep.subr.mxu0 %v58_v14 }
  0x41   :  { %266 = vmatpush3.msra.mxu0 %v58_v14 }
  0x42   :  { %267 = vmatprep.subr.mxu0 %v57_v15 }
  0x43   :  { %268 = vmatpush3.msra.mxu0 %v57_v15 }
  0x44   :  { %269 = vmatprep.subr.mxu0 %v56_v16 }
  0x45   :  { %270 = vmatpush3.msra.mxu0 %v56_v16 }
  0x46   :  { %272 = vmatmul.mubr.f32.vlgmr.msra.gmra.mxu0 %v55_v17 }
 0x106   :  { %v273_v19 = vpop.f32.mrf.mxu0 }
 0x107   :  { %v151_v20 = vadd.f32 %v273_v19, %v218_v18 }
 0x108   :  { %v145_v21 = vpop.f32.mrf.mxu0 }
 0x109   :  { %v146_v22 = vadd.f32 %v218_v18, %v145_v21  ;;  %v155_v23 = vmul.f32 0.1, %v151_v20 }
 0x10b   :  { %v154_v24 = vmul.f32 0.1, %v146_v22  ;;  %v157_v26 = vmax.f32 %v151_v20, %v155_v23 }
 0x10d   :  { %v156_v25 = vmax.f32 %v146_v22, %v154_v24  ;;  %v163_v28 = vmul.f32 %v157_v26, %v157_v26 }
 0x10f   :  { %158 = vadd.xlane.f32.xlu0 %v156_v25  ;;  %v162_v27 = vmul.f32 %v156_v25, %v156_v25 }
 0x111   :  { %164 = vadd.xlane.f32.xlu1 %v162_v27 }
 0x113   :  { %160 = vadd.xlane.f32.xlu0 %v157_v26 }
 0x115   :  { %166 = vadd.xlane.f32.xlu1 %v163_v28 }
 0x198   :  { %v159_v29 = vpop.xlane.xlu0 %158 }
 0x199   :  { %v168_v30 = vmul.f32 0.0078125, %v159_v29 }
 0x19a   :  { %v165_v31 = vpop.xlane.xlu1 %164 }
 0x19b   :  { %v172_v32 = vmul.f32 %v168_v30, %v168_v30  ;;  %v170_v33 = vmul.f32 0.0078125, %v165_v31  ;;  %v178_v45 = vsub.f32 %v156_v25, %v168_v30 }
 0x19c   :  { %v161_v34 = vpop.xlane.xlu0 %160 }
 0x19d   :  { %v174_v35 = vsub.f32 %v170_v33, %v172_v32  ;;  %v169_v36 = vmul.f32 0.0078125, %v161_v34 }
 0x19e   :  { %v167_v37 = vpop.xlane.xlu1 %166 }
 0x19f   :  { %v176_v38 = vmax.f32 %v174_v35, 0.0  ;;  %v173_v39 = vmul.f32 %v169_v36, %v169_v36  ;;  %v171_v40 = vmul.f32 0.0078125, %v167_v37  ;;  %v179_v50 = vsub.f32 %v157_v26, %v169_v36 }
 0x1a1   :  { %v180_v41 = vadd.f32 1e-05, %v176_v38  ;;  %v175_v42 = vsub.f32 %v171_v40, %v173_v39 }
 0x1a3   :  { %280 = vrsqrt.f32 %v180_v41  ;;  %v177_v43 = vmax.f32 %v175_v42, 0.0 }
 0x1a5   :  { %v181_v44 = vadd.f32 1e-05, %v177_v43 }
 0x1a7   :  { %282 = vrsqrt.f32 %v181_v44 }
 0x1b0   :  { %v281_v46 = vpop.eup %280 }
 0x1b1   :  { %v184_v48 = vmul.f32 %v281_v46, %v178_v45 }
 0x1b3   :  { %v190_v51 = vmul.f32 %v219_v47, %v184_v48 }
 0x1b4   :  { %v283_v52 = vpop.eup %282 }
 0x1b5   :  { %v185_v53 = vmul.f32 %v283_v52, %v179_v50  ;;  %v196_v54 = vadd.f32 %v220_v49, %v190_v51 }
 0x1b7   :  { %v191_v55 = vmul.f32 %v219_v47, %v185_v53  ;;  %198 = vst [vmem:[#allocation8] sm:$0xff] %v196_v54 }
 0x1b9   :  { %v197_v56 = vadd.f32 %v220_v49, %v191_v55 }
 0x1bb   :  { %199 = vst [vmem:[#allocation8 + $0x8] sm:$0xff] %v197_v56 }
 0x1bc   :  { %355 = shalt.err (!%p352_p5)
}
 0x1bd   :  { %211 = dma.vmem_to_hbm [thread:$0]  %s206_s2, 256, %s420_s3, [#allocation4], %s372_s17, %s372_s17, %s373_s18  }
 0x1be   :  { %368 = dma.done.wait [#allocation4], 256  }
 0x1bf   :  { %369 = vsyncadd [#allocation4], 4294967040 }
 0x1c0   :  { %215 = vsyncpa [#allocation3], 1 }
 0x1c1   :  { %216 = vsyncpa [#allocation6], 1 }
 0x1c2   :  { %217 = vsyncpa [#allocation4], 1 }

</bundles_post_ra>
